<compile_context>
chip_gen: v5e
topology: v5e:2x2
jax: 0.10.0
libtpu: 0.0.40
codegen_flags: <defaults>
</compile_context>

<pallas_src>
import functools

import jax
import jax.numpy as jnp
from jax.experimental import pallas as pl
from jax.experimental.pallas import tpu as pltpu

LANE = 128            # lane width of a TPU vreg
MAX_TILE_ROWS = 1024  # 1024 x 128 x 4B = 512 KiB per input block


def _mse_kernel(inv_n_ref, x_ref, y_ref, out_ref, acc_ref, *, last_block_rows):
    """Accumulate sum((x - y)^2) over row-tile blocks; finalize mean at end.

    inv_n_ref: (1,) f32 in SMEM holding 1/N.
    x_ref, y_ref: (tile_r, 128) blocks of pred / target (native dtype).
    out_ref: (1, 1) f32 output (loss).
    acc_ref: (1, 1) f32 VMEM scratch accumulator (persists across grid steps).
    last_block_rows: None if every block is full; otherwise the number of
        valid rows in the ragged final block (static Python int).
    """
    i = pl.program_id(0)
    last = pl.num_programs(0) - 1

    @pl.when(i == 0)
    def _init():
        acc_ref[...] = jnp.zeros_like(acc_ref)

    x = x_ref[...].astype(jnp.float32)
    y = y_ref[...].astype(jnp.float32)
    diff = x - y
    sq = diff * diff  # padded tail lanes are 0 - 0 = 0 -> contribute nothing

    if last_block_rows is None:
        # Every block is full: no masking anywhere.
        acc_ref[...] += jnp.sum(sq)
    else:
        @pl.when(i != last)
        def _full_block():
            acc_ref[...] += jnp.sum(sq)

        @pl.when(i == last)
        def _ragged_block():
            # Rows past `last_block_rows` hold stale VMEM data -> mask them.
            row = jax.lax.broadcasted_iota(jnp.int32, sq.shape, 0)
            acc_ref[...] += jnp.sum(jnp.where(row < last_block_rows, sq, 0.0))

    @pl.when(i == last)
    def _finalize():
        out_ref[...] = acc_ref[...] * inv_n_ref[0]


def mse_loss(pred_psi_val, psi_val):
    """Pallas equivalent of MSELoss.forward(pred_psi_val, psi_val)."""
    pred = jnp.asarray(pred_psi_val).reshape(-1)   # keep native dtype
    psi = jnp.asarray(psi_val).reshape(-1)
    n = pred.shape[0]
    assert n >= 1, "MSE loss over zero elements is undefined"
    assert psi.shape[0] == n, "pred_psi_val and psi_val must have equal size"

    bytes_accessed = n * (pred.dtype.itemsize + psi.dtype.itemsize) + 4

    # Pad (zero) only up to the next 128-lane boundary; reshape to (rows, 128)
    # is then a free layout-preserving bitcast. Never stack/pack.
    rows = pl.cdiv(n, LANE)
    padded = rows * LANE
    if padded != n:
        pred = jnp.pad(pred, (0, padded - n))
        psi = jnp.pad(psi, (0, padded - n))
    pred2 = pred.reshape(rows, LANE)
    psi2 = psi.reshape(rows, LANE)

    # Row tiling: full-array block for small inputs, 1024-row tiles otherwise.
    if rows <= MAX_TILE_ROWS:
        tile_r = rows            # block == full dim -> no (8,128) constraint issue
    else:
        tile_r = MAX_TILE_ROWS   # multiple of 8
    num_blocks = pl.cdiv(rows, tile_r)
    rem = rows % tile_r
    last_block_rows = rem if (num_blocks > 1 and rem != 0) else None

    inv_n = jnp.asarray([1.0 / n], dtype=jnp.float32)

    kernel = functools.partial(_mse_kernel, last_block_rows=last_block_rows)

    out = pl.pallas_call(
        kernel,
        out_shape=jax.ShapeDtypeStruct((1, 1), jnp.float32),
        grid=(num_blocks,),
        in_specs=[
            pl.BlockSpec(memory_space=pltpu.MemorySpace.SMEM),   # inv_n (1,)
            pl.BlockSpec((tile_r, LANE), lambda i: (i, 0)),      # pred tiles
            pl.BlockSpec((tile_r, LANE), lambda i: (i, 0)),      # psi tiles
        ],
        out_specs=pl.BlockSpec((1, 1), lambda i: (0, 0)),
        scratch_shapes=[pltpu.VMEM((1, 1), jnp.float32)],
        compiler_params=pltpu.CompilerParams(
            dimension_semantics=("arbitrary",)),
        cost_estimate=pl.CostEstimate(
            flops=3 * n, transcendentals=0, bytes_accessed=bytes_accessed),
    )(inv_n, pred2, psi2)
    return out[0, 0]


def _reference_loss(pred, psi):
    """Pure-JAX mirror of the PyTorch forward, for correctness checking."""
    p = jnp.asarray(pred, jnp.float32).reshape(-1)
    t = jnp.asarray(psi, jnp.float32).reshape(-1)
    return jnp.mean((p - t) ** 2)


if __name__ == "__main__":
    key = jax.random.PRNGKey(0)
    k1, k2, k3, k4, k5, k6 = jax.random.split(key, 6)

    # Case 1: small (N,1) vectors, non-multiple of 128 (lane padding path).
    N1 = 37
    pred1 = jax.random.normal(k1, (N1, 1), dtype=jnp.float32)
    psi1 = jax.random.uniform(k2, (N1, 1), dtype=jnp.float32)
    loss1 = mse_loss(pred1, psi1)
    jax.block_until_ready(loss1)
    ref1 = _reference_loss(pred1, psi1)
    assert jnp.allclose(loss1, ref1, atol=1e-6, rtol=1e-6), (loss1, ref1)

    # Case 2: spans multiple 128-lane rows, single grid block.
    N2 = 300
    pred2 = jax.random.normal(k3, (N2,), dtype=jnp.float32)
    psi2 = jax.random.uniform(k4, (N2,), dtype=jnp.float32)
    loss2 = mse_loss(pred2, psi2)
    jax.block_until_ready(loss2)
    ref2 = _reference_loss(pred2, psi2)
    assert jnp.allclose(loss2, ref2, atol=1e-6, rtol=1e-6), (loss2, ref2)

    # Case 3: multi-block grid with a ragged last block (exercises the
    # pl.when-gated row mask and the cross-block accumulator).
    N3 = 2 * MAX_TILE_ROWS * LANE + 300
    pred3 = jax.random.normal(k5, (N3,), dtype=jnp.float32)
    psi3 = jax.random.uniform(k6, (N3,), dtype=jnp.float32)
    loss3 = mse_loss(pred3, psi3)
    jax.block_until_ready(loss3)
    ref3 = _reference_loss(pred3, psi3)
    assert jnp.allclose(loss3, ref3, atol=1e-5, rtol=1e-5), (loss3, ref3)

    print("KERNEL_OK")
</pallas_src>

<mosaic_0001>
module attributes {stable_mosaic.version = 11 : i64} {
  func.func @_mse_kernel(%arg0: i32, %arg1: memref<1xf32, #tpu.memory_space<smem>>, %arg2: memref<1x128xf32, #tpu.memory_space<vmem>>, %arg3: memref<1x128xf32, #tpu.memory_space<vmem>>, %arg4: memref<1x1xf32, #tpu.memory_space<vmem>>, %arg5: memref<1x1xf32, #tpu.memory_space<vmem>>) attributes {dimension_semantics = [#tpu.dimension_semantics<arbitrary>], iteration_bounds = array<i64: 1>, scalar_prefetch = 0 : i64, scratch_operands = 1 : i64, tpu.core_type = #tpu.core_type<tc>, window_params = [{transform_indices = @transform_0, window_bounds = array<i64: 1>}, {transform_indices = @transform_1, window_bounds = array<i64: 1, 128>}, {transform_indices = @transform_2, window_bounds = array<i64: 1, 128>}, {pipeline_mode = #tpu.pipeline_mode<synchronous>, transform_indices = @transform_3, window_bounds = array<i64: 1, 1>}]} {
    %c0_i32 = arith.constant 0 : i32
    %0 = arith.cmpi eq, %arg0, %c0_i32 : i32
    %1 = arith.extui %0 : i1 to i32
    %c0_i32_0 = arith.constant 0 : i32
    %2 = arith.cmpi ne, %1, %c0_i32_0 : i32
    scf.if %2 {
      %cst_10 = arith.constant 0.000000e+00 : f32
      %18 = vector.broadcast %cst_10 : f32 to vector<1x1xf32>
      %c0_11 = arith.constant 0 : index
      %c0_12 = arith.constant 0 : index
      %19 = vector.load %arg5[%c0_11, %c0_12] : memref<1x1xf32, #tpu.memory_space<vmem>>, vector<1x1xf32>
      tpu.vector_store %arg5[%c0_11, %c0_12], %18 {strides = array<i32>} : memref<1x1xf32, #tpu.memory_space<vmem>>, vector<1x1xf32>,
    } else {
    }
    %c0 = arith.constant 0 : index
    %c0_1 = arith.constant 0 : index
    %3 = vector.load %arg2[%c0, %c0_1] : memref<1x128xf32, #tpu.memory_space<vmem>>, vector<1x128xf32>
    %c0_2 = arith.constant 0 : index
    %c0_3 = arith.constant 0 : index
    %4 = vector.load %arg3[%c0_2, %c0_3] : memref<1x128xf32, #tpu.memory_space<vmem>>, vector<1x128xf32>
    %5 = arith.subf %3, %4 : vector<1x128xf32>
    %6 = arith.mulf %5, %5 : vector<1x128xf32>
    %c0_4 = arith.constant 0 : index
    %c0_5 = arith.constant 0 : index
    %7 = vector.load %arg5[%c0_4, %c0_5] : memref<1x1xf32, #tpu.memory_space<vmem>>, vector<1x1xf32>
    %8 = vector.shape_cast %6 : vector<1x128xf32> to vector<1x1x128xf32>
    %cst = arith.constant dense<0.000000e+00> : vector<1xf32>
    %9 = vector.multi_reduction <add>, %8, %cst [1, 2] : vector<1x1x128xf32> to vector<1xf32>
    %10 = vector.shape_cast %9 : vector<1xf32> to vector<1x1x1xf32>
    %11 = vector.extract %10[0, 0, 0] : f32 from vector<1x1x1xf32>
    %12 = vector.broadcast %11 : f32 to vector<1x1xf32>
    %13 = arith.addf %7, %12 : vector<1x1xf32>
    %c0_6 = arith.constant 0 : index
    %c0_7 = arith.constant 0 : index
    %14 = vector.load %arg5[%c0_6, %c0_7] : memref<1x1xf32, #tpu.memory_space<vmem>>, vector<1x1xf32>
    tpu.vector_store %arg5[%c0_6, %c0_7], %13 {strides = array<i32>} : memref<1x1xf32, #tpu.memory_space<vmem>>, vector<1x1xf32>,
    %c0_i32_8 = arith.constant 0 : i32
    %15 = arith.cmpi eq, %arg0, %c0_i32_8 : i32
    %16 = arith.extui %15 : i1 to i32
    %c0_i32_9 = arith.constant 0 : i32
    %17 = arith.cmpi ne, %16, %c0_i32_9 : i32
    scf.if %17 {
      %c0_10 = arith.constant 0 : index
      %c0_11 = arith.constant 0 : index
      %18 = vector.load %arg5[%c0_10, %c0_11] : memref<1x1xf32, #tpu.memory_space<vmem>>, vector<1x1xf32>
      %c0_12 = arith.constant 0 : index
      %19 = memref.load %arg1[%c0_12] : memref<1xf32, #tpu.memory_space<smem>>
      %20 = vector.broadcast %19 : f32 to vector<1x1xf32>
      %21 = arith.mulf %18, %20 : vector<1x1xf32>
      %c0_13 = arith.constant 0 : index
      %c0_14 = arith.constant 0 : index
      %22 = vector.load %arg4[%c0_13, %c0_14] : memref<1x1xf32, #tpu.memory_space<vmem>>, vector<1x1xf32>
      tpu.vector_store %arg4[%c0_13, %c0_14], %21 {strides = array<i32>} : memref<1x1xf32, #tpu.memory_space<vmem>>, vector<1x1xf32>,
    } else {
    }
    return
  }
  func.func @transform_0(%arg0: i32) -> i32 {
    %c0_i32 = arith.constant 0 : i32
    %c0_i32_0 = arith.constant 0 : i32
    return %c0_i32 : i32
  }
  func.func @transform_1(%arg0: i32) -> (i32, i32) {
    %c0_i32 = arith.constant 0 : i32
    %c0_i32_0 = arith.constant 0 : i32
    return %arg0, %c0_i32 : i32, i32
  }
  func.func @transform_2(%arg0: i32) -> (i32, i32) {
    %c0_i32 = arith.constant 0 : i32
    %c0_i32_0 = arith.constant 0 : i32
    return %arg0, %c0_i32 : i32, i32
  }
  func.func @transform_3(%arg0: i32) -> (i32, i32) {
    %c0_i32 = arith.constant 0 : i32
    %c0_i32_0 = arith.constant 0 : i32
    %c0_i32_1 = arith.constant 0 : i32
    return %c0_i32, %c0_i32_0 : i32, i32
  }
}

</mosaic_0001>

<bundles_post_ra>
// kernel: tpu_custom_call.1
= control target key start
LH: loop header
LB: loop body
LE: loop exit
PB: predicated region body
PF: predicated region fallthrough
CT: control target
= control target key end

     0   :  { %s133_s0 = inlined_call_operand.<no memory space> [shape: f32[1], index: 0, kind: input, shape index: {}]   ;;  %s134_s1 = inlined_call_operand.vmem [shape: f32[1,128], index: 1, kind: input, shape index: {}]   ;;  %s135_s2 = inlined_call_operand.vmem [shape: f32[1,128], index: 2, kind: input, shape index: {}]   ;;  %s136_s3 = inlined_call_operand.hbm [shape: f32[1,1], index: 3, kind: output, shape index: {}]  }
   0x1   :  { %v22_v0 = vld [vmem:[%s134_s1] sm:$0x1] }
   0x2   :  { %v23_v1 = vld [vmem:[%s135_s2] sm:$0x1] }
   0x3   :  { %v24_v2 = vsub.f32 %v22_v0, %v23_v1 }
   0x4   :  { %9 = vsyncpa [#allocation5], 0  ;;  %vm27_vm0 = vcmask 1040384   ;;  %vm20_vm1 = vcmask 0   ;;  %v96_v5 = vmov 0.0   ;;  %v47_v16 = vstv %s133_s0  ;;  %s97_s17 = smov [#allocation4]  }
   0x5   :  { %v25_v3 = vmul.f32 %v24_v2, %v24_v2  ;;  %21 = vst.msk [vmem:[#allocation2] sm:$0x1] %vm20_vm1, %v96_v5  ;;  %s55_s18 = sshll.u32 %s97_s17, 4  ;;  %s57_s21 = sshll.u32 %s136_s3, 4  ;;  %s56_s18 = int_to_ptr.vmem [resolvable:$true] %s55_s18  ;;  %s58_s21 = int_to_ptr.hbm [resolvable:$true] %s57_s21 }
   0x7   :  { %v28_v4 = vsel %vm27_vm0, %v25_v3, 0.0 }
   0x8   :  { %29 = vadd.xlane.f32.xlu0 %v28_v4 }
   0xc   :  { %v26_v13 = vld [vmem:[#allocation2] sm:$0x1] }
  0x7b   :  { %v30_v6 = vpop.xlane.xlu0 %29 }
  0x7c   :  { %v31_v7 = vrot.slane %v30_v6, 4 }
  0x7e   :  { %v32_v8 = vadd.f32 %v31_v7, %v30_v6 }
  0x80   :  { %v33_v9 = vrot.slane %v32_v8, 2 }
  0x82   :  { %v34_v10 = vadd.f32 %v33_v9, %v32_v8 }
  0x84   :  { %v35_v11 = vrot.slane %v34_v10, 1 }
  0x86   :  { %v36_v12 = vadd.f32 %v35_v11, %v34_v10 }
  0x88   :  { %66 = vpush %v36_v12 }
  0xb9   :  { %s67_s1 = spop %66 }
  0xba   :  { %v38_v14 = vstv %s67_s1 }
  0xbb   :  { %v39_v15 = vadd.f32 %v38_v14, %v26_v13 }
  0xbd   :  { %41 = vst.msk [vmem:[#allocation2] sm:$0x1] %vm20_vm1, %v39_v15 }
  0xc4   :  { %v45_v17 = vld [vmem:[#allocation2] sm:$0x1] }
  0xc5   :  { %v48_v18 = vmul.f32 %v47_v16, %v45_v17 }
  0xc7   :  { %49 = vst.msk [vmem:[#allocation4] sm:$0x1] %vm20_vm1, %v48_v18 }
  0xc8   :  { %60 = dma.vmem_to_hbm [thread:$0]  %s56_s18, 16, %s58_s21, [#allocation5]  }
  0xc9   :  { %94 = dma.done.wait [#allocation5], 16  }
  0xca   :  { %95 = vsyncadd [#allocation5], 4294967280 }
  0xcb   :  { %65 = vsyncpa [#allocation5], 1 }

</bundles_post_ra>
